<compile_context>
chip_gen: v5e
topology: v5e:2x2
jax: 0.10.0
libtpu: 0.0.40
codegen_flags: <defaults>
</compile_context>

<pallas_src>
import functools

import jax
import jax.numpy as jnp
from jax import lax
from jax.experimental import pallas as pl
from jax.experimental.pallas import tpu as pltpu


def _round_up(x, m):
    return ((x + m - 1) // m) * m


def _cdiv(a, b):
    return (a + b - 1) // b


def _apply_activation(y, activation):
    if activation is None:
        return y
    if activation == "silu":
        return y * jax.nn.sigmoid(y)
    if activation == "relu":
        return jnp.maximum(y, 0.0)
    if activation == "hardswish":
        return y * jnp.clip(y + 3.0, 0.0, 6.0) * (1.0 / 6.0)
    raise ValueError(f"unsupported activation: {activation}")


def _vmem_capacity_bytes():
    try:
        return int(pltpu.get_tpu_info().vmem_capacity_bytes)
    except Exception:
        return 64 * 1024 * 1024  # conservative fallback (v7x per-TC VMEM)


def _pick_m_tile(mo_q, n, c_in, c_out, k, wp, kk_pad, out_bytes, vmem_cap):
    """Pick the flattened-spatial lane tile TM (always a multiple of 128)."""

    def wsz_for(t):
        return _round_up(t + (k - 1) * (wp + 1), 128)

    def step_bytes(t):
        x_buf = 2 * c_in * wsz_for(t) * 2                   # 2-slot bf16 window
        xs = kk_pad * t * 2                                  # stacked-operand scratch
        o_blk = 2 * c_out * t * out_bytes                    # double-buffered output
        w_blk = 2 * (c_out * kk_pad * 2 + 2 * c_out * 4)     # weights + scale + bias
        acc = 2 * c_out * t * 4                              # f32 result + epilogue temps
        return x_buf + xs + o_blk + w_blk + acc

    # Generation-aware per-step budget: v5e/v6e have 128 MiB VMEM, v7x 64 MiB/TC.
    budget = min(vmem_cap // 4, 32 * 1024 * 1024)
    cap = 4096 if vmem_cap >= 96 * 1024 * 1024 else 2048
    tm = cap
    while tm > 128 and step_bytes(tm) > budget:
        tm //= 2
    tm = max(128, min(tm, _round_up(mo_q, 128)))
    # Occupancy: keep >= 2 total grid steps so 2-TC chips (v7x) shard the work.
    if n * _cdiv(mo_q, tm) < 2 and mo_q > 128:
        tm = max(128, _round_up(_cdiv(mo_q, 2), 128))
    return tm, step_bytes(tm)


def _conv_bn_act_kernel(x_hbm, w_ref, s_ref, b_ref, o_ref,
                        xbuf, sem, xs_ref, *, k, wp, tm, wsz, c_in, kk_pad,
                        activation):
    """One (batch, M-tile) grid step of the fused conv + BN + activation.

    x_hbm:  (N, Cin, L) bf16 HBM ref (memory_space=ANY), manual window DMA
    w_ref:  (Cout, kk_pad) bf16  conv weights (contraction zero-padded)
    s_ref:  (Cout, 1) f32        BN scale (gamma * rsqrt(var+eps))
    b_ref:  (Cout, 1) f32        BN bias  (beta - mean * scale)
    o_ref:  (Cout, TM)           lane-dense output tile
    xbuf:   (2, Cin, wsz) bf16   double-buffered input window
    xs_ref: (kk_pad, TM) bf16    stacked contraction operand
    """
    b = pl.program_id(0)
    r = pl.program_id(1)
    n_tiles = pl.num_programs(1)
    slot = lax.rem(r, 2)

    def window_copy(batch, tile, slot_idx):
        start = tile * tm
        if not isinstance(start, int):
            start = pl.multiple_of(start, 128)
        return pltpu.make_async_copy(
            x_hbm.at[batch, :, pl.ds(start, wsz)],
            xbuf.at[slot_idx],
            sem.at[slot_idx])

    # Prime the window pipeline at the first tile of each image.
    @pl.when(r == 0)
    def _():
        window_copy(b, 0, 0).start()

    # Wait for the current window, then prefetch the next tile of this image
    # (hidden behind this step's compute).
    window_copy(b, r, slot).wait()

    @pl.when(r + 1 < n_tiles)
    def _():
        window_copy(b, r + 1, 1 - slot).start()

    # Build the stacked (kk_pad, TM) operand: k*k static lane-shifted taps of
    # the resident window, written straight into an aligned VMEM scratch.
    cur = xbuf.at[slot]
    kk = k * k * c_in
    for ki in range(k):
        for kj in range(k):
            off = ki * wp + kj                      # static flat shift
            row = (ki * k + kj) * c_in
            xs_ref[row:row + c_in, :] = cur[:, off:off + tm]
    if kk_pad > kk:
        xs_ref[kk:, :] = jnp.zeros((kk_pad - kk, tm), dtype=xs_ref.dtype)

    acc = jnp.dot(w_ref[...], xs_ref[...],
                  preferred_element_type=jnp.float32)        # (Cout, TM) f32
    y = acc * s_ref[...] + b_ref[...]                        # BN in f32 epilogue
    y = _apply_activation(y, activation)
    o_ref[...] = y.astype(o_ref.dtype)


@functools.partial(
    jax.jit,
    static_argnames=("kernel_size", "stride", "padding", "activation", "eps"))
def conv_module_forward(x_nchw, weight, bn_gamma, bn_beta, bn_mean, bn_var,
                        kernel_size, stride, padding=None, activation="silu",
                        eps=1e-5):
    """ConvModule forward: Conv2d(bias=False, groups=1) + BatchNorm2d (eval) + act.

    NCHW in / NCHW out, matching the PyTorch module.
    """
    if padding is None:
        padding = kernel_size // 2
    if stride != 1:
        # TODO(synk): stride > 1 needs a strided-window variant of this kernel.
        raise NotImplementedError("fused kernel currently supports stride=1")

    n, c_in, h, w = x_nchw.shape
    c_out = weight.shape[0]
    k = kernel_size
    p = padding
    wp = w + 2 * p
    hp = h + 2 * p
    ho = h + 2 * p - k + 1
    wo = w + 2 * p - k + 1
    assert ho > 0 and wo > 0

    # ---- BatchNorm (eval mode): per-channel scale / bias, applied in-kernel ----
    inv_std = lax.rsqrt(bn_var.astype(jnp.float32) + eps)
    scale = bn_gamma.astype(jnp.float32) * inv_std                    # (Cout,)
    bias = bn_beta.astype(jnp.float32) - bn_mean.astype(jnp.float32) * scale
    s_vec = scale.reshape(c_out, 1)
    b_vec = bias.reshape(c_out, 1)

    # (Cout, Cin, k, k) -> (Cout, k, k, Cin) -> (Cout, k*k*Cin), zero-padded to a
    # multiple of 16 along the contraction (bf16 sublane tile) in the wrapper.
    kk = k * k * c_in
    kk_pad = _round_up(kk, 16)
    w_mat = weight.astype(jnp.bfloat16).transpose(0, 2, 3, 1).reshape(c_out, kk)
    if kk_pad > kk:
        w_mat = jnp.pad(w_mat, ((0, 0), (0, kk_pad - kk)))

    # ---- tiling of the flattened (padded-W) spatial dim ----
    out_dtype = x_nchw.dtype
    out_bytes = jnp.dtype(out_dtype).itemsize
    mo_q = ho * wp                       # computed lanes per image (padded rows)
    vmem_cap = _vmem_capacity_bytes()
    tm, footprint = _pick_m_tile(mo_q, n, c_in, c_out, k, wp, kk_pad,
                                 out_bytes, vmem_cap)
    n_tiles = _cdiv(mo_q, tm)
    mo_pad = n_tiles * tm
    wsz = _round_up(tm + (k - 1) * (wp + 1), 128)
    l_pad = max(hp * wp, (n_tiles - 1) * tm + wsz, mo_pad)

    # Fully padded (H and W) image, flattened and cast to bf16 in one fused pass.
    xflat = jnp.pad(x_nchw, ((0, 0), (0, 0), (p, p), (p, p))).astype(jnp.bfloat16)
    xflat = xflat.reshape(n, c_in, hp * wp)
    xflat = jnp.pad(xflat, ((0, 0), (0, 0), (0, l_pad - hp * wp)))

    kernel = functools.partial(_conv_bn_act_kernel, k=k, wp=wp, tm=tm, wsz=wsz,
                               c_in=c_in, kk_pad=kk_pad, activation=activation)

    vmem_limit = max(2 * footprint + (8 << 20), 24 << 20)
    vmem_limit = min(vmem_limit, vmem_cap - (8 << 20))

    out_flat = pl.pallas_call(
        kernel,
        out_shape=jax.ShapeDtypeStruct((n, c_out, mo_pad), out_dtype),
        grid_spec=pltpu.PrefetchScalarGridSpec(
            num_scalar_prefetch=0,
            grid=(n, n_tiles),
            in_specs=[
                pl.BlockSpec(memory_space=pl.ANY),                    # x stays in HBM
                pl.BlockSpec((c_out, kk_pad), lambda b, r: (0, 0)),   # weights
                pl.BlockSpec((c_out, 1), lambda b, r: (0, 0)),        # BN scale
                pl.BlockSpec((c_out, 1), lambda b, r: (0, 0)),        # BN bias
            ],
            out_specs=pl.BlockSpec((None, c_out, tm), lambda b, r: (b, 0, r)),
            scratch_shapes=[
                pltpu.VMEM((2, c_in, wsz), jnp.bfloat16),             # window buffers
                pltpu.SemaphoreType.DMA((2,)),
                pltpu.VMEM((kk_pad, tm), jnp.bfloat16),               # stacked operand
            ],
        ),
        compiler_params=pltpu.CompilerParams(
            dimension_semantics=("parallel", "arbitrary"),
            vmem_limit_bytes=int(vmem_limit),
        ),
    )(xflat, w_mat, s_vec, b_vec)

    # (N, Cout, Ho*Wp) -> NCHW: free contiguous reshape, then drop the 2p
    # garbage columns per row that replaced the old per-tap masking.
    out = out_flat[:, :, :mo_q].reshape(n, c_out, ho, wp)[:, :, :, :wo]
    return out


def _reference(x_nchw, weight, bn_gamma, bn_beta, bn_mean, bn_var,
               stride, padding, eps=1e-5):
    """Plain-JAX f32 reference for correctness checking."""
    y = lax.conv_general_dilated(
        x_nchw, weight,
        window_strides=(stride, stride),
        padding=[(padding, padding), (padding, padding)],
        dimension_numbers=("NCHW", "OIHW", "NCHW"),
    )
    inv_std = lax.rsqrt(bn_var + eps)
    scale = (bn_gamma * inv_std)[None, :, None, None]
    bias = (bn_beta - bn_mean * bn_gamma * inv_std)[None, :, None, None]
    y = y * scale + bias
    return y * jax.nn.sigmoid(y)


if __name__ == "__main__":
    # ConvModule(in_channels=4, out_channels=8, kernel_size=3, stride=1,
    #            activation_type='silu')  -> padding = 3 // 2 = 1
    N, C_IN, H, W = 2, 4, 16, 16
    C_OUT, K, STRIDE = 8, 3, 1

    key = jax.random.PRNGKey(0)
    kx, kw, kg, kb, km, kv = jax.random.split(key, 6)

    x = jax.random.normal(kx, (N, C_IN, H, W), dtype=jnp.float32)
    weight = jax.random.normal(kw, (C_OUT, C_IN, K, K), dtype=jnp.float32) * 0.1
    bn_gamma = 1.0 + 0.1 * jax.random.normal(kg, (C_OUT,), dtype=jnp.float32)
    bn_beta = 0.1 * jax.random.normal(kb, (C_OUT,), dtype=jnp.float32)
    bn_mean = 0.05 * jax.random.normal(km, (C_OUT,), dtype=jnp.float32)
    bn_var = jnp.abs(jax.random.normal(kv, (C_OUT,), dtype=jnp.float32)) + 0.5

    out = conv_module_forward(x, weight, bn_gamma, bn_beta, bn_mean, bn_var,
                              kernel_size=K, stride=STRIDE, activation="silu")
    out = jax.block_until_ready(out)

    ref = _reference(x, weight, bn_gamma, bn_beta, bn_mean, bn_var,
                     stride=STRIDE, padding=K // 2)
    assert out.shape == (N, C_OUT, H, W), out.shape
    # bf16 matmul operands with f32 accumulation -> bf16-appropriate tolerance.
    assert jnp.allclose(out, ref, atol=5e-2, rtol=5e-2), \
        float(jnp.max(jnp.abs(out - ref)))

    print("KERNEL_OK")
</pallas_src>

<mosaic_0001>
module attributes {stable_mosaic.version = 11 : i64} {
  func.func @_conv_bn_act_kernel(%arg0: i32, %arg1: i32, %arg2: memref<2x4x512xbf16, #tpu.memory_space<any>>, %arg3: memref<8x48xbf16, #tpu.memory_space<vmem>>, %arg4: memref<8x1xf32, #tpu.memory_space<vmem>>, %arg5: memref<8x1xf32, #tpu.memory_space<vmem>>, %arg6: memref<1x8x384xf32, #tpu.memory_space<vmem>>, %arg7: memref<2x4x512xbf16, #tpu.memory_space<vmem>>, %arg8: memref<2x!tpu.dma_semaphore, #tpu.memory_space<semaphore_mem>>, %arg9: memref<48x384xbf16, #tpu.memory_space<vmem>>) attributes {dimension_semantics = [#tpu.dimension_semantics<parallel>, #tpu.dimension_semantics<arbitrary>], iteration_bounds = array<i64: 2, 1>, scalar_prefetch = 0 : i64, scratch_operands = 3 : i64, tpu.core_type = #tpu.core_type<tc>, window_params = [{}, {pipeline_mode = #tpu.pipeline_mode<synchronous>, transform_indices = @transform_1, window_bounds = array<i64: 8, 48>}, {pipeline_mode = #tpu.pipeline_mode<synchronous>, transform_indices = @transform_2, window_bounds = array<i64: 8, 1>}, {pipeline_mode = #tpu.pipeline_mode<synchronous>, transform_indices = @transform_3, window_bounds = array<i64: 8, 1>}, {transform_indices = @transform_4, window_bounds = array<i64: 1, 8, 384>}]} {
    %c2_i32 = arith.constant 2 : i32
    %0 = arith.remsi %arg1, %c2_i32 : i32
    %c0_i32 = arith.constant 0 : i32
    %1 = arith.cmpi eq, %arg1, %c0_i32 : i32
    %2 = arith.extui %1 : i1 to i32
    %c0_i32_0 = arith.constant 0 : i32
    %3 = arith.cmpi ne, %2, %c0_i32_0 : i32
    scf.if %3 {
      %c0_i32_59 = arith.constant 0 : i32
      %c0_i32_60 = arith.constant 0 : i32
      %c0_i32_61 = arith.constant 0 : i32
      %c0_i32_62 = arith.constant 0 : i32
      %72 = tpu.memref_slice %arg2[%arg0, %c0_i32_61, %c0_i32_62] : memref<2x4x512xbf16, #tpu.memory_space<any>> -> memref<1x4x512xbf16, #tpu.memory_space<any>>
      %73 = tpu.memref_squeeze %72 : memref<1x4x512xbf16, #tpu.memory_space<any>> -> memref<4x512xbf16, #tpu.memory_space<any>>
      %c0_i32_63 = arith.constant 0 : i32
      %c0_i32_64 = arith.constant 0 : i32
      %74 = tpu.memref_slice %arg7[%c0_i32_59, %c0_i32_63, %c0_i32_64] : memref<2x4x512xbf16, #tpu.memory_space<vmem>> -> memref<1x4x512xbf16, #tpu.memory_space<vmem>>
      %75 = tpu.memref_squeeze %74 : memref<1x4x512xbf16, #tpu.memory_space<vmem>> -> memref<4x512xbf16, #tpu.memory_space<vmem>>
      %76 = tpu.memref_slice %arg8[%c0_i32_60] : memref<2x!tpu.dma_semaphore, #tpu.memory_space<semaphore_mem>> -> memref<1x!tpu.dma_semaphore, #tpu.memory_space<semaphore_mem>>
      %77 = tpu.memref_squeeze %76 : memref<1x!tpu.dma_semaphore, #tpu.memory_space<semaphore_mem>> -> memref<!tpu.dma_semaphore, #tpu.memory_space<semaphore_mem>>
      tpu.enqueue_dma source(%73 : memref<4x512xbf16, #tpu.memory_space<any>>) target(%75 : memref<4x512xbf16, #tpu.memory_space<vmem>>) target_semaphore(%77 : memref<!tpu.dma_semaphore, #tpu.memory_space<semaphore_mem>>)
    } else {
    }
    %c384_i32 = arith.constant 384 : i32
    %4 = arith.muli %arg1, %c384_i32 : i32
    %5 = tpu.assume_multiple %4, 128 : i32
    %c0_i32_1 = arith.constant 0 : i32
    %6 = tpu.memref_slice %arg2[%arg0, %c0_i32_1, %5] : memref<2x4x512xbf16, #tpu.memory_space<any>> -> memref<1x4x512xbf16, #tpu.memory_space<any>>
    %7 = tpu.memref_squeeze %6 : memref<1x4x512xbf16, #tpu.memory_space<any>> -> memref<4x512xbf16, #tpu.memory_space<any>>
    %c0_i32_2 = arith.constant 0 : i32
    %c0_i32_3 = arith.constant 0 : i32
    %8 = tpu.memref_slice %arg7[%0, %c0_i32_2, %c0_i32_3] : memref<2x4x512xbf16, #tpu.memory_space<vmem>> -> memref<1x4x512xbf16, #tpu.memory_space<vmem>>
    %9 = tpu.memref_squeeze %8 : memref<1x4x512xbf16, #tpu.memory_space<vmem>> -> memref<4x512xbf16, #tpu.memory_space<vmem>>
    %10 = tpu.memref_slice %arg8[%0] : memref<2x!tpu.dma_semaphore, #tpu.memory_space<semaphore_mem>> -> memref<1x!tpu.dma_semaphore, #tpu.memory_space<semaphore_mem>>
    %11 = tpu.memref_squeeze %10 : memref<1x!tpu.dma_semaphore, #tpu.memory_space<semaphore_mem>> -> memref<!tpu.dma_semaphore, #tpu.memory_space<semaphore_mem>>
    tpu.wait_dma2 semaphore(%11 : memref<!tpu.dma_semaphore, #tpu.memory_space<semaphore_mem>>) src(%7 : memref<4x512xbf16, #tpu.memory_space<any>>) dst(%9 : memref<4x512xbf16, #tpu.memory_space<vmem>>)
    %c1_i32 = arith.constant 1 : i32
    %12 = arith.addi %arg1, %c1_i32 : i32
    %c1_i32_4 = arith.constant 1 : i32
    %13 = arith.cmpi slt, %12, %c1_i32_4 : i32
    %14 = arith.extui %13 : i1 to i32
    %c0_i32_5 = arith.constant 0 : i32
    %15 = arith.cmpi ne, %14, %c0_i32_5 : i32
    scf.if %15 {
      %c1_i32_59 = arith.constant 1 : i32
      %72 = arith.addi %arg1, %c1_i32_59 : i32
      %c1_i32_60 = arith.constant 1 : i32
      %73 = arith.subi %c1_i32_60, %0 : i32
      %c384_i32_61 = arith.constant 384 : i32
      %74 = arith.muli %72, %c384_i32_61 : i32
      %75 = tpu.assume_multiple %74, 128 : i32
      %c0_i32_62 = arith.constant 0 : i32
      %76 = tpu.memref_slice %arg2[%arg0, %c0_i32_62, %75] : memref<2x4x512xbf16, #tpu.memory_space<any>> -> memref<1x4x512xbf16, #tpu.memory_space<any>>
      %77 = tpu.memref_squeeze %76 : memref<1x4x512xbf16, #tpu.memory_space<any>> -> memref<4x512xbf16, #tpu.memory_space<any>>
      %c0_i32_63 = arith.constant 0 : i32
      %c0_i32_64 = arith.constant 0 : i32
      %78 = tpu.memref_slice %arg7[%73, %c0_i32_63, %c0_i32_64] : memref<2x4x512xbf16, #tpu.memory_space<vmem>> -> memref<1x4x512xbf16, #tpu.memory_space<vmem>>
      %79 = tpu.memref_squeeze %78 : memref<1x4x512xbf16, #tpu.memory_space<vmem>> -> memref<4x512xbf16, #tpu.memory_space<vmem>>
      %80 = tpu.memref_slice %arg8[%73] : memref<2x!tpu.dma_semaphore, #tpu.memory_space<semaphore_mem>> -> memref<1x!tpu.dma_semaphore, #tpu.memory_space<semaphore_mem>>
      %81 = tpu.memref_squeeze %80 : memref<1x!tpu.dma_semaphore, #tpu.memory_space<semaphore_mem>> -> memref<!tpu.dma_semaphore, #tpu.memory_space<semaphore_mem>>
      tpu.enqueue_dma source(%77 : memref<4x512xbf16, #tpu.memory_space<any>>) target(%79 : memref<4x512xbf16, #tpu.memory_space<vmem>>) target_semaphore(%81 : memref<!tpu.dma_semaphore, #tpu.memory_space<semaphore_mem>>)
    } else {
    }
    %c0_i32_6 = arith.constant 0 : i32
    %c0_i32_7 = arith.constant 0 : i32
    %16 = tpu.memref_slice %arg7[%0, %c0_i32_6, %c0_i32_7] : memref<2x4x512xbf16, #tpu.memory_space<vmem>> -> memref<1x4x512xbf16, #tpu.memory_space<vmem>>
    %17 = tpu.memref_squeeze %16 : memref<1x4x512xbf16, #tpu.memory_space<vmem>> -> memref<4x512xbf16, #tpu.memory_space<vmem>>
    %c0 = arith.constant 0 : index
    %c0_8 = arith.constant 0 : index
    %18 = vector.load %17[%c0, %c0_8] : memref<4x512xbf16, #tpu.memory_space<vmem>>, vector<4x384xbf16>
    %c0_9 = arith.constant 0 : index
    %c0_10 = arith.constant 0 : index
    %19 = vector.load %arg9[%c0_9, %c0_10] : memref<48x384xbf16, #tpu.memory_space<vmem>>, vector<4x384xbf16>
    tpu.vector_store %arg9[%c0_9, %c0_10], %18 {strides = array<i32>} : memref<48x384xbf16, #tpu.memory_space<vmem>>, vector<4x384xbf16>,
    %c0_i32_11 = arith.constant 0 : i32
    %c0_i32_12 = arith.constant 0 : i32
    %20 = tpu.memref_slice %arg7[%0, %c0_i32_11, %c0_i32_12] : memref<2x4x512xbf16, #tpu.memory_space<vmem>> -> memref<1x4x512xbf16, #tpu.memory_space<vmem>>
    %21 = tpu.memref_squeeze %20 : memref<1x4x512xbf16, #tpu.memory_space<vmem>> -> memref<4x512xbf16, #tpu.memory_space<vmem>>
    %c0_13 = arith.constant 0 : index
    %c1 = arith.constant 1 : index
    %22 = vector.load %21[%c0_13, %c1] : memref<4x512xbf16, #tpu.memory_space<vmem>>, vector<4x384xbf16>
    %c4 = arith.constant 4 : index
    %c0_14 = arith.constant 0 : index
    %23 = vector.load %arg9[%c4, %c0_14] : memref<48x384xbf16, #tpu.memory_space<vmem>>, vector<4x384xbf16>
    tpu.vector_store %arg9[%c4, %c0_14], %22 {strides = array<i32>} : memref<48x384xbf16, #tpu.memory_space<vmem>>, vector<4x384xbf16>,
    %c0_i32_15 = arith.constant 0 : i32
    %c0_i32_16 = arith.constant 0 : i32
    %24 = tpu.memref_slice %arg7[%0, %c0_i32_15, %c0_i32_16] : memref<2x4x512xbf16, #tpu.memory_space<vmem>> -> memref<1x4x512xbf16, #tpu.memory_space<vmem>>
    %25 = tpu.memref_squeeze %24 : memref<1x4x512xbf16, #tpu.memory_space<vmem>> -> memref<4x512xbf16, #tpu.memory_space<vmem>>
    %c0_17 = arith.constant 0 : index
    %c2 = arith.constant 2 : index
    %26 = vector.load %25[%c0_17, %c2] : memref<4x512xbf16, #tpu.memory_space<vmem>>, vector<4x384xbf16>
    %c8 = arith.constant 8 : index
    %c0_18 = arith.constant 0 : index
    %27 = vector.load %arg9[%c8, %c0_18] : memref<48x384xbf16, #tpu.memory_space<vmem>>, vector<4x384xbf16>
    tpu.vector_store %arg9[%c8, %c0_18], %26 {strides = array<i32>} : memref<48x384xbf16, #tpu.memory_space<vmem>>, vector<4x384xbf16>,
    %c0_i32_19 = arith.constant 0 : i32
    %c0_i32_20 = arith.constant 0 : i32
    %28 = tpu.memref_slice %arg7[%0, %c0_i32_19, %c0_i32_20] : memref<2x4x512xbf16, #tpu.memory_space<vmem>> -> memref<1x4x512xbf16, #tpu.memory_space<vmem>>
    %29 = tpu.memref_squeeze %28 : memref<1x4x512xbf16, #tpu.memory_space<vmem>> -> memref<4x512xbf16, #tpu.memory_space<vmem>>
    %c0_21 = arith.constant 0 : index
    %c18 = arith.constant 18 : index
    %30 = vector.load %29[%c0_21, %c18] : memref<4x512xbf16, #tpu.memory_space<vmem>>, vector<4x384xbf16>
    %c12 = arith.constant 12 : index
    %c0_22 = arith.constant 0 : index
    %31 = vector.load %arg9[%c12, %c0_22] : memref<48x384xbf16, #tpu.memory_space<vmem>>, vector<4x384xbf16>
    tpu.vector_store %arg9[%c12, %c0_22], %30 {strides = array<i32>} : memref<48x384xbf16, #tpu.memory_space<vmem>>, vector<4x384xbf16>,
    %c0_i32_23 = arith.constant 0 : i32
    %c0_i32_24 = arith.constant 0 : i32
    %32 = tpu.memref_slice %arg7[%0, %c0_i32_23, %c0_i32_24] : memref<2x4x512xbf16, #tpu.memory_space<vmem>> -> memref<1x4x512xbf16, #tpu.memory_space<vmem>>
    %33 = tpu.memref_squeeze %32 : memref<1x4x512xbf16, #tpu.memory_space<vmem>> -> memref<4x512xbf16, #tpu.memory_space<vmem>>
    %c0_25 = arith.constant 0 : index
    %c19 = arith.constant 19 : index
    %34 = vector.load %33[%c0_25, %c19] : memref<4x512xbf16, #tpu.memory_space<vmem>>, vector<4x384xbf16>
    %c16 = arith.constant 16 : index
    %c0_26 = arith.constant 0 : index
    %35 = vector.load %arg9[%c16, %c0_26] : memref<48x384xbf16, #tpu.memory_space<vmem>>, vector<4x384xbf16>
    tpu.vector_store %arg9[%c16, %c0_26], %34 {strides = array<i32>} : memref<48x384xbf16, #tpu.memory_space<vmem>>, vector<4x384xbf16>,
    %c0_i32_27 = arith.constant 0 : i32
    %c0_i32_28 = arith.constant 0 : i32
    %36 = tpu.memref_slice %arg7[%0, %c0_i32_27, %c0_i32_28] : memref<2x4x512xbf16, #tpu.memory_space<vmem>> -> memref<1x4x512xbf16, #tpu.memory_space<vmem>>
    %37 = tpu.memref_squeeze %36 : memref<1x4x512xbf16, #tpu.memory_space<vmem>> -> memref<4x512xbf16, #tpu.memory_space<vmem>>
    %c0_29 = arith.constant 0 : index
    %c20 = arith.constant 20 : index
    %38 = vector.load %37[%c0_29, %c20] : memref<4x512xbf16, #tpu.memory_space<vmem>>, vector<4x384xbf16>
    %c20_30 = arith.constant 20 : index
    %c0_31 = arith.constant 0 : index
    %39 = vector.load %arg9[%c20_30, %c0_31] : memref<48x384xbf16, #tpu.memory_space<vmem>>, vector<4x384xbf16>
    tpu.vector_store %arg9[%c20_30, %c0_31], %38 {strides = array<i32>} : memref<48x384xbf16, #tpu.memory_space<vmem>>, vector<4x384xbf16>,
    %c0_i32_32 = arith.constant 0 : i32
    %c0_i32_33 = arith.constant 0 : i32
    %40 = tpu.memref_slice %arg7[%0, %c0_i32_32, %c0_i32_33] : memref<2x4x512xbf16, #tpu.memory_space<vmem>> -> memref<1x4x512xbf16, #tpu.memory_space<vmem>>
    %41 = tpu.memref_squeeze %40 : memref<1x4x512xbf16, #tpu.memory_space<vmem>> -> memref<4x512xbf16, #tpu.memory_space<vmem>>
    %c0_34 = arith.constant 0 : index
    %c36 = arith.constant 36 : index
    %42 = vector.load %41[%c0_34, %c36] : memref<4x512xbf16, #tpu.memory_space<vmem>>, vector<4x384xbf16>
    %c24 = arith.constant 24 : index
    %c0_35 = arith.constant 0 : index
    %43 = vector.load %arg9[%c24, %c0_35] : memref<48x384xbf16, #tpu.memory_space<vmem>>, vector<4x384xbf16>
    tpu.vector_store %arg9[%c24, %c0_35], %42 {strides = array<i32>} : memref<48x384xbf16, #tpu.memory_space<vmem>>, vector<4x384xbf16>,
    %c0_i32_36 = arith.constant 0 : i32
    %c0_i32_37 = arith.constant 0 : i32
    %44 = tpu.memref_slice %arg7[%0, %c0_i32_36, %c0_i32_37] : memref<2x4x512xbf16, #tpu.memory_space<vmem>> -> memref<1x4x512xbf16, #tpu.memory_space<vmem>>
    %45 = tpu.memref_squeeze %44 : memref<1x4x512xbf16, #tpu.memory_space<vmem>> -> memref<4x512xbf16, #tpu.memory_space<vmem>>
    %c0_38 = arith.constant 0 : index
    %c37 = arith.constant 37 : index
    %46 = vector.load %45[%c0_38, %c37] : memref<4x512xbf16, #tpu.memory_space<vmem>>, vector<4x384xbf16>
    %c28 = arith.constant 28 : index
    %c0_39 = arith.constant 0 : index
    %47 = vector.load %arg9[%c28, %c0_39] : memref<48x384xbf16, #tpu.memory_space<vmem>>, vector<4x384xbf16>
    tpu.vector_store %arg9[%c28, %c0_39], %46 {strides = array<i32>} : memref<48x384xbf16, #tpu.memory_space<vmem>>, vector<4x384xbf16>,
    %c0_i32_40 = arith.constant 0 : i32
    %c0_i32_41 = arith.constant 0 : i32
    %48 = tpu.memref_slice %arg7[%0, %c0_i32_40, %c0_i32_41] : memref<2x4x512xbf16, #tpu.memory_space<vmem>> -> memref<1x4x512xbf16, #tpu.memory_space<vmem>>
    %49 = tpu.memref_squeeze %48 : memref<1x4x512xbf16, #tpu.memory_space<vmem>> -> memref<4x512xbf16, #tpu.memory_space<vmem>>
    %c0_42 = arith.constant 0 : index
    %c38 = arith.constant 38 : index
    %50 = vector.load %49[%c0_42, %c38] : memref<4x512xbf16, #tpu.memory_space<vmem>>, vector<4x384xbf16>
    %c32 = arith.constant 32 : index
    %c0_43 = arith.constant 0 : index
    %51 = vector.load %arg9[%c32, %c0_43] : memref<48x384xbf16, #tpu.memory_space<vmem>>, vector<4x384xbf16>
    tpu.vector_store %arg9[%c32, %c0_43], %50 {strides = array<i32>} : memref<48x384xbf16, #tpu.memory_space<vmem>>, vector<4x384xbf16>,
    %cst = arith.constant 0.000000e+00 : bf16
    %52 = vector.broadcast %cst : bf16 to vector<12x384xbf16>
    %c36_44 = arith.constant 36 : index
    %c0_45 = arith.constant 0 : index
    %53 = vector.load %arg9[%c36_44, %c0_45] : memref<48x384xbf16, #tpu.memory_space<vmem>>, vector<12x384xbf16>
    tpu.vector_store %arg9[%c36_44, %c0_45], %52 {strides = array<i32>} : memref<48x384xbf16, #tpu.memory_space<vmem>>, vector<12x384xbf16>,
    %c0_46 = arith.constant 0 : index
    %c0_47 = arith.constant 0 : index
    %54 = vector.load %arg3[%c0_46, %c0_47] : memref<8x48xbf16, #tpu.memory_space<vmem>>, vector<8x48xbf16>
    %c0_48 = arith.constant 0 : index
    %c0_49 = arith.constant 0 : index
    %55 = vector.load %arg9[%c0_48, %c0_49] : memref<48x384xbf16, #tpu.memory_space<vmem>>, vector<48x384xbf16>
    %cst_50 = arith.constant dense<0.000000e+00> : vector<8x384xf32>
    %56 = tpu.matmul %54, %55, %cst_50 {dimension_numbers = #tpu.dot_dimension_numbers<[1], [0], [0], [1], [0, 0, 1, 1], [], []>} : vector<8x48xbf16>, vector<48x384xbf16>, vector<8x384xf32> -> vector<8x384xf32>
    %c0_51 = arith.constant 0 : index
    %c0_52 = arith.constant 0 : index
    %57 = vector.load %arg4[%c0_51, %c0_52] : memref<8x1xf32, #tpu.memory_space<vmem>>, vector<8x1xf32>
    %58 = vector.broadcast %57 : vector<8x1xf32> to vector<8x384xf32>
    %59 = arith.mulf %56, %58 : vector<8x384xf32>
    %c0_53 = arith.constant 0 : index
    %c0_54 = arith.constant 0 : index
    %60 = vector.load %arg5[%c0_53, %c0_54] : memref<8x1xf32, #tpu.memory_space<vmem>>, vector<8x1xf32>
    %61 = vector.broadcast %60 : vector<8x1xf32> to vector<8x384xf32>
    %62 = arith.addf %59, %61 : vector<8x384xf32>
    %63 = arith.negf %62 : vector<8x384xf32>
    %64 = math.exp %63 : vector<8x384xf32>
    %cst_55 = arith.constant 1.000000e+00 : f32
    %65 = vector.broadcast %cst_55 : f32 to vector<8x384xf32>
    %66 = arith.addf %65, %64 : vector<8x384xf32>
    %67 = arith.divf %65, %66 : vector<8x384xf32>
    %68 = arith.mulf %62, %67 : vector<8x384xf32>
    %c0_56 = arith.constant 0 : index
    %c0_57 = arith.constant 0 : index
    %c0_58 = arith.constant 0 : index
    %69 = vector.load %arg6[%c0_56, %c0_57, %c0_58] : memref<1x8x384xf32, #tpu.memory_space<vmem>>, vector<1x8x384xf32>
    %70 = vector.shape_cast %69 : vector<1x8x384xf32> to vector<8x384xf32>
    %71 = vector.shape_cast %68 : vector<8x384xf32> to vector<1x8x384xf32>
    tpu.vector_store %arg6[%c0_56, %c0_57, %c0_58], %71 {strides = array<i32>} : memref<1x8x384xf32, #tpu.memory_space<vmem>>, vector<1x8x384xf32>,
    return
  }
  func.func @transform_1(%arg0: i32, %arg1: i32) -> (i32, i32) {
    %c0_i32 = arith.constant 0 : i32
    %c0_i32_0 = arith.constant 0 : i32
    %c0_i32_1 = arith.constant 0 : i32
    return %c0_i32, %c0_i32_0 : i32, i32
  }
  func.func @transform_2(%arg0: i32, %arg1: i32) -> (i32, i32) {
    %c0_i32 = arith.constant 0 : i32
    %c0_i32_0 = arith.constant 0 : i32
    %c0_i32_1 = arith.constant 0 : i32
    return %c0_i32, %c0_i32_0 : i32, i32
  }
  func.func @transform_3(%arg0: i32, %arg1: i32) -> (i32, i32) {
    %c0_i32 = arith.constant 0 : i32
    %c0_i32_0 = arith.constant 0 : i32
    %c0_i32_1 = arith.constant 0 : i32
    return %c0_i32, %c0_i32_0 : i32, i32
  }
  func.func @transform_4(%arg0: i32, %arg1: i32) -> (i32, i32, i32) {
    %c0_i32 = arith.constant 0 : i32
    %c0_i32_0 = arith.constant 0 : i32
    return %arg0, %c0_i32, %arg1 : i32, i32, i32
  }
}

</mosaic_0001>

<bundles_post_ra>
// kernel: conv_module_forward.1
= control target key start
LH: loop header
LB: loop body
LE: loop exit
PB: predicated region body
PF: predicated region fallthrough
CT: control target
= control target key end

     0   :  { %s933_s15 = smov 0   ;;  %s935_s16 = smov 0   ;;  %s1034_s0 = inlined_call_operand.vmem [shape: bf16[2,4,512], index: 0, kind: input, shape index: {}]   ;;  %s1035_s1 = inlined_call_operand.vmem [shape: bf16[8,48], index: 1, kind: input, shape index: {}]   ;;  %s1036_s2 = inlined_call_operand.vmem [shape: f32[8,1], index: 2, kind: input, shape index: {}]   ;;  %s1037_s3 = inlined_call_operand.vmem [shape: f32[8,1], index: 3, kind: input, shape index: {}]   ;;  %s1038_s4 = inlined_call_operand.vmem [shape: f32[2,8,384], index: 4, kind: output, shape index: {}]  }
   0x1   :  { %s937_s17 = smov 0  }
   0x2 LB: > { %s26_s18 = sadd.s32 1, %s893_s16  ;;  %p759_p0 = scmp.ge.s32.totalorder %s897_s17, 1  ;;  %s897_s17 = sphi %s937_s17, %s14_s17   ;;  %s893_s16 = sphi %s935_s16, %s1040_s16   ;;  %s889_s15 = sphi %s933_s15, %s1039_s15  }
   0x3   : > { %p28_p1 = scmp.ge.s32.totalorder %s26_s18, 2  ;;  %p142_p2 = scmp.lt.s32.totalorder %s897_s17, 3 }
   0x5   : > { %s1042_s18 = smov (%p28_p1, %s26_s18), 0  ;;  %p143_p3 = pnand %p759_p0, %p142_p2 }
   0x6   : > { %p166_p4 = scmp.lt.s32.totalorder (!%p143_p3), %s889_s15, 1  ;;  %s812_s19 = sshll.u32 (!%p143_p3), %s889_s15, 3 }
   0x7   : > { %146 = sbr.rel (%p143_p3) target bundleno = 403 (0x193), region = 32  ;;  %s188_s22 = scalar_lea.vmem (!%p143_p3), %s1034_s0, %s812_s19 }
   0xc   : > { %s1044_s15 = smov (!%p166_p4, %s889_s15), 1  ;;  %v215_v0 = vld [vmem:[%s188_s22] sm:$0xff] }
   0xd   : > { %216 = vst [vmem:[#allocation2] sm:$0xff] %v215_v0  ;;  %s824_s23 = smul.u32 24, %s1044_s15 }
   0xf   : > { %s957_s26 = scalar_lea.vmem %s1038_s4, %s824_s23 }
  0x10   : > { %222 = vsyncadd [#allocation3], 128 }
  0x11   : > { %885 = dma.done.wait [#allocation3], 128 }
  0x12   : > { %886 = vsyncadd [#allocation3], 4294967168  ;;  %s899_s27 = smov 127   ;;  %s900_s28 = smov 126   ;;  %vm351_vm0 = vcmask 900096   ;;  %vm308_vm1 = vcmask 1039360  }
  0x13   : > { %s901_s29 = smov 110   ;;  %s902_s30 = smov 109   ;;  %vm329_vm2 = vcmask 1031168   ;;  %vm437_vm3 = vcmask 744448   ;;  %vm372_vm4 = vcmask 891904   ;;  %v907_v37 = vmov 0  }
  0x14   : > { %v283_v1 = vld [vmem:[#allocation2] sm:$0x3f]  ;;  %s903_s5 = smov 108   ;;  %s904_s6 = smov 92   ;;  %858 = vset.pattern.permute.xlu1 %v907_v37  ;;  %859 = vset.pattern.permute.xlu2 %v907_v37  ;;  %466 = vst [vmem:[#allocation4 + $0x38] sm:$0xc] %v907_v37 }
  0x15   : > { %285 = vst [vmem:[#allocation1] ss:$2 sm:$0xff] %v283_v1  ;;  %v292_v2 = vld [vmem:[#allocation2] sm:$0xff]  ;;  %s905_s7 = smov 91   ;;  %s906_s8 = smov 90   ;;  %860 = vset.pattern.permute.xlu0 %v907_v37  ;;  %vm394_vm5 = vcmask 883712  }
  0x16   : > { %468 = vst [vmem:[#allocation4 + $0x44] sm:$0xf] %v907_v37  ;;  %vm306_vm6 = vcmask 1043456   ;;  %vm415_vm7 = vcmask 752640   ;;  %vm458_vm8 = vcmask 736256   ;;  %v573_v1 = vld [vmem:[%s1036_s2] sm:$0xff] }
  0x17   : > { %465 = vst [vmem:[#allocation4 + $0x30] sm:$0xcc] %v907_v37  ;;  %vm530_vm9 = vcmask 392192  }
  0x18   : > { %467 = vst [vmem:[#allocation4 + $0x3c] sm:$0xff] %v907_v37 }
  0x1c   : > { %v286_v3 = vld.sshfl [vmem:[#allocation1] sm:$0xff pattern:$0x75643120]  ;;  %v287_v4 = vld.sshfl [vmem:[#allocation1 + $0x8] sm:$0xff pattern:$0x75643120] }
  0x1d   : > { %295 = vst [vmem:[#allocation1 + $0x1] ss:$2 sm:$0xff] %v292_v2 }
  0x1e   : > { %290 = vst [vmem:[#allocation4] sm:$0x33] %v286_v3 }
  0x1f   : > { %291 = vst [vmem:[#allocation4 + $0x8] sm:$0x3] %v287_v4 }
  0x24   : > { %v298_v5 = vld.sshfl [vmem:[#allocation1 + $0x8] sm:$0xff pattern:$0x75643120]  ;;  %v296_v6 = vld.sshfl [vmem:[#allocation1] sm:$0xff pattern:$0x75643120] }
  0x25   : > { %302 = vrot.lane.b32.xlu0 %v298_v5, %s899_s27  ;;  %317 = vst [vmem:[#allocation1] ss:$2 sm:$0xff] %v292_v2 }
  0x2c   : > { %v320_v7 = vld.sshfl [vmem:[#allocation1 + $0x8] sm:$0xff pattern:$0x75643120]  ;;  %v318_v8 = vld.sshfl [vmem:[#allocation1] sm:$0xff pattern:$0x75643120] }
  0x2d   : > { %324 = vrot.lane.b32.xlu1 %v320_v7, %s900_s28  ;;  %339 = vst [vmem:[#allocation1 + $0x1] ss:$2 sm:$0xff] %v292_v2 }
  0x34   : > { %v340_v9 = vld.sshfl [vmem:[#allocation1] sm:$0xff pattern:$0x75643120]  ;;  %v342_v10 = vld.sshfl [vmem:[#allocation1 + $0x8] sm:$0xff pattern:$0x75643120] }
  0x35   : > { %346 = vrot.lane.b32.xlu2 %v342_v10, %s901_s29  ;;  %360 = vst [vmem:[#allocation1] ss:$2 sm:$0xff] %v292_v2  ;;  %v823_v10 = vld [vmem:[#allocation4 + $0x40] sm:$0xf0] }
  0x3c   : > { %v363_v11 = vld.sshfl [vmem:[#allocation1 + $0x8] sm:$0xff pattern:$0x75643120]  ;;  %v361_v12 = vld.sshfl [vmem:[#allocation1] sm:$0xff pattern:$0x75643120] }
  0x3d   : > { %367 = vrot.lane.b32.xlu0 %v363_v11, %s902_s30  ;;  %382 = vst [vmem:[#allocation1 + $0x1] ss:$2 sm:$0xff] %v292_v2 }
  0x44   : > { %v385_v13 = vld.sshfl [vmem:[#allocation1 + $0x8] sm:$0xff pattern:$0x75643120]  ;;  %v383_v14 = vld.sshfl [vmem:[#allocation1] sm:$0xff pattern:$0x75643120] }
  0x45   : > { %389 = vrot.lane.b32.xlu1 %v385_v13, %s903_s5  ;;  %365 = vrot.lane.b32.xlu0 %v361_v12, %s902_s30  ;;  %403 = vst [vmem:[#allocation1] ss:$2 sm:$0xff] %v292_v2  ;;  %v822_v13 = vld [vmem:[#allocation4 + $0x38] sm:$0xf0] }
  0x4c   : > { %v406_v15 = vld.sshfl [vmem:[#allocation1 + $0x8] sm:$0xff pattern:$0x75643120]  ;;  %v404_v16 = vld.sshfl [vmem:[#allocation1] sm:$0xff pattern:$0x75643120] }
  0x4d   : > { %410 = vrot.lane.b32.xlu1 %v406_v15, %s904_s6  ;;  %408 = vrot.lane.b32.xlu2 %v404_v16, %s904_s6  ;;  %425 = vst [vmem:[#allocation1 + $0x1] ss:$2 sm:$0xff] %v292_v2 }
  0x54   : > { %v426_v17 = vld.sshfl [vmem:[#allocation1] sm:$0xff pattern:$0x75643120]  ;;  %v428_v18 = vld.sshfl [vmem:[#allocation1 + $0x8] sm:$0xff pattern:$0x75643120] }
  0x55   : > { %387 = vrot.lane.b32.xlu1 %v383_v14, %s903_s5  ;;  %432 = vrot.lane.b32.xlu2 %v428_v18, %s905_s7  ;;  %446 = vst [vmem:[#allocation1] ss:$2 sm:$0xff] %v292_v2  ;;  %v582_v2 = vld [vmem:[%s1037_s3] sm:$0xff]  ;;  %v794_v14 = vld [vmem:[#allocation4 + $0x3c] sm:$0xf0] }
  0x5c   : > { %v449_v19 = vld.sshfl [vmem:[#allocation1 + $0x8] sm:$0xff pattern:$0x75643120]  ;;  %v447_v20 = vld.sshfl [vmem:[#allocation1] sm:$0xff pattern:$0x75643120] }
  0x5d   : > { %300 = vrot.lane.b32.xlu1 %v296_v6, %s899_s27  ;;  %453 = vrot.lane.b32.xlu0 %v449_v19, %s906_s8 }
  0x5e   : > { %451 = vrot.lane.b32.xlu2 %v447_v20, %s906_s8 }
  0x65   : > { %430 = vrot.lane.b32.xlu0 %v426_v17, %s905_s7  ;;  %576 = vperm.xlu1 %858, %v573_v1  }
  0x66   : > { %322 = vrot.lane.b32.xlu2 %v318_v8, %s900_s28 }
  0x6d   : > { %344 = vrot.lane.b32.xlu0 %v340_v9, %s901_s29 }
  0x6e   : > { %585 = vperm.xlu2 %859, %v582_v2  }
  0x8f   : > { %v965_v21 = vpop.permute.xlu2 %346 }
  0x90   : > { %v349_v22 = vrot.slane %v965_v21, 4 }
  0x92   : > { %v353_v23 = vsel %vm351_vm0, %v965_v21, %v349_v22 }
  0x93   : > { %357 = vst [vmem:[#allocation4 + $0x14] sm:$0xc] %v353_v23 }
  0x97   : > { %v972_v24 = vpop.permute.xlu0 %302 }
  0x98   : > { %v305_v25 = vrot.slane %v972_v24, 4 }
  0x9a   : > { %v310_v26 = vsel %vm308_vm1, %v972_v24, %v305_v25 }
  0x9b   : > { %314 = vst [vmem:[#allocation4 + $0x8] sm:$0xc] %v310_v26 }
  0x9f   : > { %v325_v27 = vpop.permute.xlu1 %324 }
  0xa0   : > { %v327_v28 = vrot.slane %v325_v27, 4 }
  0xa2   : > { %v331_v29 = vsel %vm329_vm2, %v325_v27, %v327_v28 }
  0xa3   : > { %335 = vst [vmem:[#allocation4 + $0x14] sm:$0x3] %v331_v29 }
  0xa7   : > { %v409_v30 = vpop.permute.xlu2 %408 }
  0xa8   : > { %v412_v46 = vrot.slane %v409_v30, 4 }
  0xaa   : > { %v817_v29 = vld [vmem:[#allocation4 + $0x10] sm:$0xf0] }
  0xaf   : > { %v980_v31 = vpop.permute.xlu2 %432  ;;  %v368_v32 = vpop.permute.xlu0 %367 }
  0xb0   : > { %v435_v33 = vrot.slane %v980_v31, 4  ;;  %v370_v34 = vrot.slane %v368_v32, 4 }
  0xb2   : > { %v439_v35 = vsel %vm437_vm3, %v980_v31, %v435_v33  ;;  %v374_v36 = vsel %vm372_vm4, %v368_v32, %v370_v34 }
  0xb3   : > { %443 = vst [vmem:[#allocation4 + $0x2c] sm:$0xc] %v439_v35 }
  0xb4   : > { %378 = vst [vmem:[#allocation4 + $0x20] sm:$0x3] %v374_v36 }
  0xb7   : > { %v390_v38 = vpop.permute.xlu1 %389  ;;  %v366_v39 = vpop.permute.xlu0 %365 }
  0xb8   : > { %v392_v40 = vrot.slane %v390_v38, 4  ;;  %v452_v41 = vpop.permute.xlu2 %451  ;;  %v369_v42 = vrot.slane %v366_v39, 4 }
  0xb9   : > { %v455_v60 = vrot.slane %v452_v41, 4 }
  0xba   : > { %v396_v43 = vsel %vm394_vm5, %v390_v38, %v392_v40  ;;  %v371_v44 = vsel %vm306_vm6, %v369_v42, %v370_v34 }
  0xbb   : > { %400 = vst [vmem:[#allocation4 + $0x20] sm:$0xc] %v396_v43  ;;  %v373_v45 = vsel %vm372_vm4, %v366_v39, %v371_v44  ;;  %v469_v39 = vld [vmem:[%s1035_s1] sm:$0xf] }
  0xbc   : > { %377 = vst [vmem:[#allocation4 + $0x18] sm:$0x33] %v373_v45 }
  0xbf   : > { %v411_v47 = vpop.permute.xlu1 %410 }
  0xc0   : > { %v413_v48 = vrot.slane %v411_v47, 4  ;;  %v323_v49 = vpop.permute.xlu2 %322 }
  0xc1   : > { %v326_v50 = vrot.slane %v323_v49, 4 }
  0xc2   : > { %v414_v51 = vsel %vm306_vm6, %v412_v46, %v413_v48  ;;  %v417_v52 = vsel %vm415_vm7, %v411_v47, %v413_v48  ;;  %v788_v24 = vld [vmem:[#allocation4 + $0x20] sm:$0xf] }
  0xc3   : > { %v416_v53 = vsel %vm415_vm7, %v409_v30, %v414_v51  ;;  %421 = vst [vmem:[#allocation4 + $0x2c] sm:$0x3] %v417_v52  ;;  %v328_v54 = vsel %vm306_vm6, %v326_v50, %v327_v28  ;;  %v776_v28 = vld [vmem:[#allocation4 + $0x8] sm:$0xf] }
  0xc4   : > { %420 = vst [vmem:[#allocation4 + $0x24] sm:$0x33] %v416_v53  ;;  %v330_v55 = vsel %vm329_vm2, %v323_v49, %v328_v54 }
  0xc5   : > { %334 = vst [vmem:[#allocation4 + $0xc] sm:$0x33] %v330_v55 }
  0xc7   : > { %v388_v56 = vpop.permute.xlu1 %387 }
  0xc8   : > { %v391_v57 = vrot.slane %v388_v56, 4  ;;  %v586_v46 = vpop.permute.xlu2 %585 }
  0xca   : > { %v393_v58 = vsel %vm306_vm6, %v391_v57, %v392_v40  ;;  %v820_v17 = vld [vmem:[#allocation4 + $0x28] sm:$0xf0] }
  0xcb   : > { %v395_v59 = vsel %vm394_vm5, %v388_v56, %v393_v58  ;;  %v789_v26 = vor.u32 %v820_v17, %v788_v24 }
  0xcc   : > { %399 = vst [vmem:[#allocation4 + $0x18] sm:$0xcc] %v395_v59 }
  0xcf   : > { %v301_v61 = vpop.permute.xlu1 %300  ;;  %v454_v62 = vpop.permute.xlu0 %453 }
  0xd0   : > { %v304_v63 = vrot.slane %v301_v61, 4  ;;  %v456_v0 = vrot.slane %v454_v62, 4 }
  0xd2   : > { %v307_v3 = vsel %vm306_vm6, %v304_v63, %v305_v25  ;;  %v457_v4 = vsel %vm306_vm6, %v455_v60, %v456_v0  ;;  %v460_v5 = vsel %vm458_vm8, %v454_v62, %v456_v0 }
  0xd3   : > { %v309_v6 = vsel %vm308_vm1, %v301_v61, %v307_v3  ;;  %v459_v7 = vsel %vm458_vm8, %v452_v41, %v457_v4  ;;  %464 = vst [vmem:[#allocation4 + $0x38] sm:$0x3] %v460_v5  ;;  %v780_v31 = vld [vmem:[#allocation4 + $0x18] sm:$0xf]  ;;  %v818_v35 = vld [vmem:[#allocation4 + $0x1c] sm:$0xf] }
  0xd4   : > { %313 = vst [vmem:[#allocation4] sm:$0xcc] %v309_v6 }
  0xd5   : > { %463 = vst [vmem:[#allocation4 + $0x30] sm:$0x33] %v459_v7 }
  0xd7   : > { %v431_v8 = vpop.permute.xlu0 %430  ;;  %v577_v44 = vpop.permute.xlu1 %576 }
  0xd8   : > { %v434_v9 = vrot.slane %v431_v8, 4 }
  0xda   : > { %v436_v11 = vsel %vm306_vm6, %v434_v9, %v435_v33  ;;  %v800_v12 = vld [vmem:[#allocation4 + $0x38] sm:$0xf]  ;;  %v777_v33 = vor.u32 %v817_v29, %v776_v28 }
  0xdb   : > { %v438_v15 = vsel %vm437_vm3, %v431_v8, %v436_v11  ;;  %v801_v16 = vor.u32 %v823_v10, %v800_v12  ;;  %v768_v21 = vld [vmem:[#allocation4] sm:$0xf]  ;;  %v815_v40 = vld [vmem:[#allocation4 + $0x4] sm:$0xf] }
  0xdc   : > { %442 = vst [vmem:[#allocation4 + $0x24] sm:$0xcc] %v438_v15  ;;  %v792_v18 = vld [vmem:[#allocation4 + $0x30] sm:$0xf]  ;;  %v821_v19 = vld [vmem:[#allocation4 + $0x34] sm:$0xf] }
  0xdd   : > { %565 = vmatpush.bf16.msra.mxu2 %v801_v16  ;;  %v793_v20 = vor.u32 %v822_v13, %v792_v18  ;;  %v797_v23 = vor.u32 %v821_v19, %v794_v14 }
  0xdf   : > { %539 = vmatpush.bf16.msra.mxu0 %v793_v20  ;;  %552 = vmatpush.bf16.msra.mxu1 %v797_v23  ;;  %v345_v25 = vpop.permute.xlu0 %344 }
  0xe0   : > { %v348_v27 = vrot.slane %v345_v25, 4 }
  0xe1   : > { %566 = vmatpush.bf16.msra.mxu2 %v789_v26 }
  0xe2   : > { %v350_v30 = vsel %vm306_vm6, %v348_v27, %v349_v22 }
  0xe3   : > { %v352_v32 = vsel %vm351_vm0, %v345_v25, %v350_v30  ;;  %v819_v34 = vld [vmem:[#allocation4 + $0x20] sm:$0xf0]  ;;  %v782_v36 = vld [vmem:[#allocation4 + $0x24] sm:$0xf0] }
  0xe4   : > { %356 = vst [vmem:[#allocation4 + $0xc] sm:$0xcc] %v352_v32  ;;  %v781_v37 = vor.u32 %v819_v34, %v780_v31  ;;  %v785_v38 = vor.u32 %v818_v35, %v782_v36 }
  0xe5   : > { %567 = vmatpush.bf16.msra.mxu2 %v777_v33 }
  0xe6   : > { %540 = vmatpush.bf16.msra.mxu0 %v781_v37  ;;  %553 = vmatpush.bf16.msra.mxu1 %v785_v38 }
  0xe8   : > { %804 = vmatmul.msk.bf16.vlgmr.msra.gmra.mxu2 %vm530_vm9, %v469_v39 }
  0xeb   : > { %v816_v22 = vld [vmem:[#allocation4 + $0x8] sm:$0xf0]  ;;  %v770_v41 = vld [vmem:[#allocation4 + $0xc] sm:$0xf0] }
  0xec   : > { %v769_v42 = vor.u32 %v816_v22, %v768_v21  ;;  %v773_v43 = vor.u32 %v815_v40, %v770_v41 }
  0xee   : > { %541 = vmatpush.bf16.msra.mxu0 %v769_v42  ;;  %554 = vmatpush.bf16.msra.mxu1 %v773_v43 }
  0xf1   : > { %802 = vmatmul.msk.bf16.vlgmr.msra.gmra.mxu0 %vm530_vm9, %v469_v39  ;;  %803 = vmatmul.msk.bf16.vlgmr.msra.gmra.mxu1 %vm530_vm9, %v469_v39 }
 0x16b   : > { %v569_v45 = vpop.f32.mrf.mxu2 }
 0x16c   : > { %v581_v47 = vmul.f32 %v577_v44, %v569_v45 }
 0x16e   : > { %v590_v48 = vadd.f32 %v586_v46, %v581_v47  ;;  %v543_v49 = vpop.f32.mrf.mxu0  ;;  %v556_v50 = vpop.f32.mrf.mxu1 }
 0x16f   : > { %v579_v51 = vmul.f32 %v577_v44, %v543_v49  ;;  %v580_v52 = vmul.f32 %v577_v44, %v556_v50 }
 0x170   : > { %v807_v53 = vmul.f32 -1.442695, %v590_v48 }
 0x171   : > { %v588_v54 = vadd.f32 %v586_v46, %v579_v51  ;;  %v1018_v55 = vadd.f32 %v586_v46, %v580_v52 }
 0x172   : > { %861 = vpow2.f32 %v807_v53 }
 0x173   : > { %v805_v56 = vmul.f32 -1.442695, %v588_v54  ;;  %v806_v57 = vmul.f32 -1.442695, %v1018_v55  ;;  %v571_v58 = vpop.f32.mrf.mxu2 }
 0x175   : > { %863 = vpow2.f32 %v805_v56 }
 0x176   : > { %865 = vpow2.f32 %v806_v57  ;;  %v545_v59 = vpop.f32.mrf.mxu0  ;;  %v558_v60 = vpop.f32.mrf.mxu1 }
 0x178   : > { %v862_v61 = vpop.eup %861 }
 0x179   : > { %v602_v62 = vadd.f32 1.0, %v862_v61 }
 0x17b   : > { %v864_v63 = vpop.eup %863  ;;  %867 = vrcp.f32 %v602_v62  ;;  %v642_v5 = vand.u32 2147483647, %v602_v62  ;;  %v644_v8 = vand.u32 2147483648, %v602_v62  ;;  %vm638_vm11 = vweird.f32 %v602_v62 }
 0x17c   : > { %v866_v0 = vpop.eup %865  ;;  %v600_v1 = vadd.f32 1.0, %v864_v63 }
 0x17d   : > { %v601_v2 = vadd.f32 1.0, %v866_v0  ;;  %vm643_vm12 = vcmp.eq.f32.partialorder %v642_v5, 8.507059e+37  ;;  %v645_v15 = vor.u32 1.1754944e-38, %v644_v8 }
 0x17e   : > { %869 = vrcp.f32 %v600_v1  ;;  %v614_v16 = vand.u32 2147483648, %v600_v1  ;;  %v612_v19 = vand.u32 2147483647, %v600_v1  ;;  %vm608_vm0 = vweird.f32 %v600_v1 }
 0x17f   : > { %871 = vrcp.f32 %v601_v2  ;;  %v629_v20 = vand.u32 2147483648, %v601_v2  ;;  %v627_v25 = vand.u32 2147483647, %v601_v2  ;;  %vm623_vm2 = vweird.f32 %v601_v2 }
 0x180   : > { %v615_v29 = vor.u32 1.1754944e-38, %v614_v16  ;;  %vm613_vm3 = vcmp.eq.f32.partialorder %v612_v19, 8.507059e+37 }
 0x181   : > { %v868_v3 = vpop.eup %867  ;;  %v630_v32 = vor.u32 1.1754944e-38, %v629_v20  ;;  %vm628_vm5 = vcmp.eq.f32.partialorder %v627_v25, 8.507059e+37 }
 0x182   : > { %v634_v4 = vmul.f32 %v868_v3, %v602_v62  ;;  %vm639_vm10 = vweird.f32 %v868_v3 }
 0x183   : > { %vm640_vm13 = vmor %vm638_vm11, %vm639_vm10 }
 0x184   : > { %v870_v6 = vpop.eup %869  ;;  %v635_v7 = vsub.f32 1.0, %v634_v4 }
 0x185   : > { %v872_v9 = vpop.eup %871  ;;  %v604_v10 = vmul.f32 %v870_v6, %v600_v1  ;;  %vm609_vm14 = vweird.f32 %v870_v6 }
 0x186   : > { %v636_v11 = vmul.f32 %v868_v3, %v635_v7  ;;  %v619_v12 = vmul.f32 %v872_v9, %v601_v2  ;;  %vm624_vm15 = vweird.f32 %v872_v9  ;;  %vm610_vm1 = vmor %vm608_vm0, %vm609_vm14 }
 0x187   : > { %v605_v13 = vsub.f32 1.0, %v604_v10  ;;  %vm625_vm4 = vmor %vm623_vm2, %vm624_vm15 }
 0x188   : > { %v637_v14 = vadd.f32 %v868_v3, %v636_v11  ;;  %v620_v17 = vsub.f32 1.0, %v619_v12 }
 0x189   : > { %v606_v18 = vmul.f32 %v870_v6, %v605_v13 }
 0x18a   : > { %v641_v23 = vsel %vm640_vm13, %v868_v3, %v637_v14  ;;  %v621_v24 = vmul.f32 %v872_v9, %v620_v17 }
 0x18b   : > { %v646_v26 = vsel %vm643_vm12, %v645_v15, %v641_v23  ;;  %v607_v27 = vadd.f32 %v870_v6, %v606_v18 }
 0x18c   : > { %v650_v28 = vmul.f32 %v646_v26, %v590_v48  ;;  %v622_v30 = vadd.f32 %v872_v9, %v621_v24 }
 0x18d   : > { %v611_v31 = vsel %vm610_vm1, %v870_v6, %v607_v27 }
 0x18e   : > { %653 = vst [vmem:[%s957_s26 + $0x10] sm:$0xff] %v650_v28  ;;  %v616_v33 = vsel %vm613_vm3, %v615_v29, %v611_v31  ;;  %v626_v34 = vsel %vm625_vm4, %v872_v9, %v622_v30 }
 0x18f   : > { %v648_v35 = vmul.f32 %v616_v33, %v588_v54  ;;  %v631_v36 = vsel %vm628_vm5, %v630_v32, %v626_v34 }
 0x190   : > { %v649_v37 = vmul.f32 %v631_v36, %v1018_v55 }
 0x191   : > { %651 = vst [vmem:[%s957_s26] sm:$0xff] %v648_v35 }
 0x192   : > { %652 = vst [vmem:[%s957_s26 + $0x8] sm:$0xff] %v649_v37 }
 0x193 PF: > { %s14_s17 = sadd.s32 1, %s897_s17   ;;  %s1039_s15 = smov %s893_s16 }
 0x194   : > { %p11_p5 = scmp.ge.s32.totalorder %s14_s17, 4   ;;  %s1040_s16 = smov %s1042_s18 }
 0x196   :  { %13 = sbr.rel (!%p11_p5) target bundleno = 2 (0x2), region = 154 }
 0x19b   :  { %684 = vsyncmov [#allocation3] }
 0x19e   :  { %s685_s19 = vpop.sfrf %684 }
 0x19f   :  { %p810_p6 = scmp.ne.s32.totalorder %s685_s19, 0 }
 0x1a1   :  { %689 = shalt.err (%p810_p6)  }
 0x1a2   :  { %691 = vsyncmov [#allocation3 + $0x1] }
 0x1a5   :  { %s692_s20 = vpop.sfrf %691 }
 0x1a6   :  { %p811_p7 = scmp.ne.s32.totalorder %s692_s20, 0 }
 0x1a8   :  { %696 = shalt.err (%p811_p7)  }

</bundles_post_ra>
